<compile_context>
chip_gen: v5e
topology: v5e:2x2
jax: 0.10.0
libtpu: 0.0.40
codegen_flags: <defaults>
</compile_context>

<pallas_src>
import functools
import math

import jax
import jax.numpy as jnp
from jax.experimental import pallas as pl
from jax.experimental.pallas import tpu as pltpu


def _flash_attention_kernel(q_ref, k_ref, v_ref, o_ref,
                            q_sc, m_sc, l_sc, acc_sc,
                            *, scale_log2e, g_heads, exp_dtype, approx_recip):
    """One (head-group, q-tile) block; online softmax over the KV grid axis.

    Block shapes:
      q_ref        : (G, TQ, D)
      k_ref, v_ref : (G, TK, D)
      o_ref        : (1, TQ, G*D)   lane-dense packed output
    Scratch (persistent across the KV axis):
      q_sc         : (G, TQ, D)   Q * (1/sqrt(d)) * log2(e), input dtype
      m_sc, l_sc   : (G, TQ, 1)   f32 running max / running denominator
      acc_sc       : (G, TQ, D)   f32 running (unnormalized) output
    """
    kv = pl.program_id(2)

    @pl.when(kv == 0)
    def _():
        # Q is resident across the KV axis: fold the softmax scale (and log2e
        # for the base-2 exp) into it once per q tile, not every KV step.
        q_sc[...] = q_ref[...] * jnp.asarray(scale_log2e, dtype=q_ref.dtype)
        m_sc[...] = jnp.full_like(m_sc, -jnp.inf)
        l_sc[...] = jnp.zeros_like(l_sc)
        acc_sc[...] = jnp.zeros_like(acc_sc)

    # QK^T on the MXU with f32 accumulation; contraction is over the last axis
    # of both operands, so no K transpose / XLU relayout.  Logits are already
    # in the log2 domain (log2(e) folded into Q).
    s = jnp.einsum("gqd,gkd->gqk", q_sc[...], k_ref[...],
                   preferred_element_type=jnp.float32)            # (G, TQ, TK)

    m_prev = m_sc[...]
    m_new = jnp.maximum(m_prev, s.max(axis=-1, keepdims=True))
    alpha = jnp.exp2(m_prev - m_new)                              # (G, TQ, 1) f32
    # The large exp runs in bf16 on the bf16 path (bf16 EUP on v6e/v7x doubles
    # throughput on the likely critical unit for D=64); f32 for f32 inputs.
    p = jnp.exp2((s - m_new).astype(exp_dtype))                   # (G, TQ, TK)
    l_sc[...] = alpha * l_sc[...] + jnp.sum(p, axis=-1, keepdims=True,
                                            dtype=jnp.float32)
    acc_sc[...] = alpha * acc_sc[...] + jnp.einsum(
        "gqk,gkd->gqd", p.astype(v_ref.dtype), v_ref[...],
        preferred_element_type=jnp.float32)
    m_sc[...] = m_new

    @pl.when(kv == pl.num_programs(2) - 1)
    def _():
        inv_l = pl.reciprocal(l_sc[...], approx=approx_recip)     # (G, TQ, 1)
        out_tile = acc_sc[...] * inv_l                            # (G, TQ, D) f32
        # Lane-dense writeback: pack the G heads into the lane axis so the
        # output block's last dim is G*D (>= 128 when D < 128) -> unmasked
        # stores and a lane-dense HBM layout.  One cheap relayout per q tile.
        if g_heads > 1:
            packed = jnp.concatenate([out_tile[h] for h in range(g_heads)],
                                     axis=-1)                     # (TQ, G*D)
        else:
            packed = out_tile[0]
        o_ref[0] = packed.astype(o_ref.dtype)


def _round_up(x, m):
    return (x + m - 1) // m * m


def _choose_seq_tile(s, target, granule):
    """Largest divisor of s that is <= target and a multiple of `granule`.

    Falls back to the full dimension (always a legal block) for awkward s.
    """
    if s <= target:
        return s
    t = target - target % granule
    for cand in range(t, granule - 1, -granule):
        if s % cand == 0:
            return cand
    return s


def _choose_head_group(bh, d):
    """Pack G heads per grid step so G*D spans roughly one 128-lane vreg."""
    target = max(1, 128 // max(d, 1))
    g = 1
    for cand in range(1, min(target, bh) + 1):
        if bh % cand == 0:
            g = cand
    return g


def attention(query, key, value, *, q_tile=512, kv_tile=256):
    """Pallas TPU equivalent of the PyTorch Attention.forward.

    query/key/value: [..., S, D], identical shapes (e.g. [B, H, S, D]).
    """
    assert query.shape == key.shape == value.shape
    assert query.dtype == key.dtype == value.dtype
    *lead, S, D = query.shape
    BH = math.prod(lead) if lead else 1
    dtype = query.dtype

    qf = query.reshape(BH, S, D)
    kf = key.reshape(BH, S, D)
    vf = value.reshape(BH, S, D)

    itemsize = jnp.dtype(dtype).itemsize
    # Sublane-packing granule: 8 rows for f32, 16 for bf16, 32 for 8-bit.
    granule = max(8, 32 // itemsize)

    tq = _choose_seq_tile(S, q_tile, granule)
    tk = _choose_seq_tile(S, kv_tile, granule)
    G = _choose_head_group(BH, D)

    # Keep >= 2 blocks on the parallel axes (v7x dual TensorCore / megacore)
    # as long as the q tile stays large enough to remain MXU-bound.
    if (BH // G) * (S // tq) < 2:
        half = _choose_seq_tile(S, max(tq // 2, granule), granule)
        if half >= 256:
            tq = half

    grid = (BH // G, S // tq, S // tk)
    # softmax(x/sqrt(d)) computed in base 2: exp(x/sqrt(d)) = 2^(x/(sqrt(d)*ln2))
    scale_log2e = 1.0 / (math.sqrt(D) * math.log(2.0))
    is_bf16 = dtype == jnp.bfloat16

    q_spec = pl.BlockSpec((G, tq, D), lambda g, qi, ki: (g, qi, 0))
    kv_spec = pl.BlockSpec((G, tk, D), lambda g, qi, ki: (g, ki, 0))
    # Output is head-packed along the lane axis: (BH//G, S, G*D).
    o_spec = pl.BlockSpec((1, tq, G * D), lambda g, qi, ki: (g, qi, 0))

    # VMEM budget: double-buffered q/k/v/o tiles + scratch, padded to the
    # (8, 128) vreg tiling, ~4x headroom for compiler temporaries.  Floor at
    # the 32 MiB default scoped limit, cap at 56 MiB (headroom on v7x 64 MiB).
    d_pad = _round_up(D, 128)
    gd_pad = _round_up(G * D, 128)
    tq_pad = _round_up(tq, 8)
    tk_pad = _round_up(tk, 8)
    io_bytes = 2 * (G * (tq_pad + 2 * tk_pad) * d_pad + tq_pad * gd_pad) * itemsize
    scratch_bytes = G * tq_pad * (d_pad * itemsize          # scaled-Q scratch
                                  + 2 * 128 * 4             # m, l (lane-padded)
                                  + d_pad * 4)              # f32 accumulator
    vmem_limit = int(min(max(4 * (io_bytes + scratch_bytes), 32 << 20), 56 << 20))

    kernel = functools.partial(
        _flash_attention_kernel,
        scale_log2e=scale_log2e,
        g_heads=G,
        exp_dtype=jnp.bfloat16 if is_bf16 else jnp.float32,
        approx_recip=bool(is_bf16),
    )

    out = pl.pallas_call(
        kernel,
        out_shape=jax.ShapeDtypeStruct((BH // G, S, G * D), dtype),
        grid_spec=pltpu.PrefetchScalarGridSpec(
            num_scalar_prefetch=0,
            grid=grid,
            in_specs=[q_spec, kv_spec, kv_spec],
            out_specs=o_spec,
            scratch_shapes=[
                pltpu.VMEM((G, tq, D), dtype),        # scaled Q (hoisted)
                pltpu.VMEM((G, tq, 1), jnp.float32),  # running max m
                pltpu.VMEM((G, tq, 1), jnp.float32),  # running denominator l
                pltpu.VMEM((G, tq, D), jnp.float32),  # output accumulator
            ],
        ),
        compiler_params=pltpu.CompilerParams(
            # Head-group and query-tile axes are independent; only KV reduces.
            dimension_semantics=("parallel", "parallel", "arbitrary"),
            vmem_limit_bytes=vmem_limit,
        ),
    )(qf, kf, vf)

    # Undo the lane-axis head packing: (BH//G, S, G*D) -> (BH, S, D).
    if G > 1:
        out = out.reshape(BH // G, S, G, D).transpose(0, 2, 1, 3).reshape(BH, S, D)
    else:
        out = out.reshape(BH, S, D)
    return out.reshape(query.shape)


def _reference_attention(query, key, value):
    d_k = query.shape[-1]
    q = query.astype(jnp.float32)
    k = key.astype(jnp.float32)
    v = value.astype(jnp.float32)
    scores = jnp.einsum("...qd,...kd->...qk", q, k) / math.sqrt(d_k)
    probs = jax.nn.softmax(scores, axis=-1)
    return jnp.einsum("...qk,...kd->...qd", probs, v)


if __name__ == "__main__":
    root = jax.random.PRNGKey(0)

    # Small f32 shape matching the PyTorch module's test surface.
    kq, kk, kv = jax.random.split(root, 3)
    B, H, S, D = 2, 2, 8, 32
    q = jax.random.normal(kq, (B, H, S, D), dtype=jnp.float32)
    k = jax.random.normal(kk, (B, H, S, D), dtype=jnp.float32)
    v = jax.random.normal(kv, (B, H, S, D), dtype=jnp.float32)

    out = jax.block_until_ready(attention(q, k, v))
    ref = _reference_attention(q, k, v)
    assert out.shape == (B, H, S, D)
    assert jnp.allclose(out, ref, atol=2e-3, rtol=2e-3), "f32 mismatch vs reference"

    # A second shape that exercises the flash path (multiple KV steps, bf16 MXU
    # operands, bf16 exp, head packing, lane-dense output writeback).
    kq2, kk2, kv2 = jax.random.split(jax.random.fold_in(root, 1), 3)
    B2, H2, S2, D2 = 1, 2, 512, 64
    q2 = jax.random.normal(kq2, (B2, H2, S2, D2), dtype=jnp.bfloat16)
    k2 = jax.random.normal(kk2, (B2, H2, S2, D2), dtype=jnp.bfloat16)
    v2 = jax.random.normal(kv2, (B2, H2, S2, D2), dtype=jnp.bfloat16)

    out2 = jax.block_until_ready(attention(q2, k2, v2))
    ref2 = _reference_attention(q2, k2, v2)
    assert out2.shape == (B2, H2, S2, D2)
    err = jnp.abs(out2.astype(jnp.float32) - ref2)
    max_err = jnp.max(err)
    mean_err = jnp.mean(err)
    assert max_err < 1e-1, f"bf16 flash-tiled max error vs reference ({max_err})"
    assert mean_err < 1e-2, f"bf16 flash-tiled mean error vs reference ({mean_err})"

    print("KERNEL_OK")
</pallas_src>

<mosaic_0001>
module attributes {stable_mosaic.version = 11 : i64} {
  func.func @_flash_attention_kernel(%arg0: i32, %arg1: i32, %arg2: i32, %arg3: memref<4x8x32xf32, #tpu.memory_space<vmem>>, %arg4: memref<4x8x32xf32, #tpu.memory_space<vmem>>, %arg5: memref<4x8x32xf32, #tpu.memory_space<vmem>>, %arg6: memref<1x8x128xf32, #tpu.memory_space<vmem>>, %arg7: memref<4x8x32xf32, #tpu.memory_space<vmem>>, %arg8: memref<4x8x1xf32, #tpu.memory_space<vmem>>, %arg9: memref<4x8x1xf32, #tpu.memory_space<vmem>>, %arg10: memref<4x8x32xf32, #tpu.memory_space<vmem>>) attributes {dimension_semantics = [#tpu.dimension_semantics<parallel>, #tpu.dimension_semantics<parallel>, #tpu.dimension_semantics<arbitrary>], iteration_bounds = array<i64: 1, 1, 1>, scalar_prefetch = 0 : i64, scratch_operands = 4 : i64, tpu.core_type = #tpu.core_type<tc>, window_params = [{transform_indices = @transform_0, window_bounds = array<i64: 4, 8, 32>}, {transform_indices = @transform_1, window_bounds = array<i64: 4, 8, 32>}, {transform_indices = @transform_2, window_bounds = array<i64: 4, 8, 32>}, {transform_indices = @transform_3, window_bounds = array<i64: 1, 8, 128>}]} {
    %c0_i32 = arith.constant 0 : i32
    %0 = arith.cmpi eq, %arg2, %c0_i32 : i32
    %1 = arith.extui %0 : i1 to i32
    %c0_i32_0 = arith.constant 0 : i32
    %2 = arith.cmpi ne, %1, %c0_i32_0 : i32
    scf.if %2 {
      %c0_32 = arith.constant 0 : index
      %c0_33 = arith.constant 0 : index
      %c0_34 = arith.constant 0 : index
      %32 = vector.load %arg3[%c0_32, %c0_33, %c0_34] : memref<4x8x32xf32, #tpu.memory_space<vmem>>, vector<4x8x32xf32>
      %cst_35 = arith.constant 0.255034864 : f32
      %33 = vector.broadcast %cst_35 : f32 to vector<4x8x32xf32>
      %34 = arith.mulf %32, %33 : vector<4x8x32xf32>
      %c0_36 = arith.constant 0 : index
      %c0_37 = arith.constant 0 : index
      %c0_38 = arith.constant 0 : index
      %35 = vector.load %arg7[%c0_36, %c0_37, %c0_38] : memref<4x8x32xf32, #tpu.memory_space<vmem>>, vector<4x8x32xf32>
      tpu.vector_store %arg7[%c0_36, %c0_37, %c0_38], %34 {strides = array<i32>} : memref<4x8x32xf32, #tpu.memory_space<vmem>>, vector<4x8x32xf32>,
      %cst_39 = arith.constant 0xFF800000 : f32
      %36 = vector.broadcast %cst_39 : f32 to vector<4x8x1xf32>
      %c0_40 = arith.constant 0 : index
      %c0_41 = arith.constant 0 : index
      %c0_42 = arith.constant 0 : index
      %37 = vector.load %arg8[%c0_40, %c0_41, %c0_42] : memref<4x8x1xf32, #tpu.memory_space<vmem>>, vector<4x8x1xf32>
      tpu.vector_store %arg8[%c0_40, %c0_41, %c0_42], %36 {strides = array<i32>} : memref<4x8x1xf32, #tpu.memory_space<vmem>>, vector<4x8x1xf32>,
      %cst_43 = arith.constant 0.000000e+00 : f32
      %38 = vector.broadcast %cst_43 : f32 to vector<4x8x1xf32>
      %c0_44 = arith.constant 0 : index
      %c0_45 = arith.constant 0 : index
      %c0_46 = arith.constant 0 : index
      %39 = vector.load %arg9[%c0_44, %c0_45, %c0_46] : memref<4x8x1xf32, #tpu.memory_space<vmem>>, vector<4x8x1xf32>
      tpu.vector_store %arg9[%c0_44, %c0_45, %c0_46], %38 {strides = array<i32>} : memref<4x8x1xf32, #tpu.memory_space<vmem>>, vector<4x8x1xf32>,
      %cst_47 = arith.constant 0.000000e+00 : f32
      %40 = vector.broadcast %cst_47 : f32 to vector<4x8x32xf32>
      %c0_48 = arith.constant 0 : index
      %c0_49 = arith.constant 0 : index
      %c0_50 = arith.constant 0 : index
      %41 = vector.load %arg10[%c0_48, %c0_49, %c0_50] : memref<4x8x32xf32, #tpu.memory_space<vmem>>, vector<4x8x32xf32>
      tpu.vector_store %arg10[%c0_48, %c0_49, %c0_50], %40 {strides = array<i32>} : memref<4x8x32xf32, #tpu.memory_space<vmem>>, vector<4x8x32xf32>,
    } else {
    }
    %c0 = arith.constant 0 : index
    %c0_1 = arith.constant 0 : index
    %c0_2 = arith.constant 0 : index
    %3 = vector.load %arg7[%c0, %c0_1, %c0_2] : memref<4x8x32xf32, #tpu.memory_space<vmem>>, vector<4x8x32xf32>
    %c0_3 = arith.constant 0 : index
    %c0_4 = arith.constant 0 : index
    %c0_5 = arith.constant 0 : index
    %4 = vector.load %arg4[%c0_3, %c0_4, %c0_5] : memref<4x8x32xf32, #tpu.memory_space<vmem>>, vector<4x8x32xf32>
    "tpu.trace_start"() <{level = 10 : i32, message = "gqd,gkd->gqk"}> : () -> ()
    %cst = arith.constant dense<0.000000e+00> : vector<4x8x8xf32>
    %5 = tpu.matmul %3, %4, %cst {dimension_numbers = #tpu.dot_dimension_numbers<[2], [2], [1], [1], [0, 0, 0, 1, 1, 1], [0], [0]>} : vector<4x8x32xf32>, vector<4x8x32xf32>, vector<4x8x8xf32> -> vector<4x8x8xf32>
    "tpu.trace_stop"() : () -> ()
    %c0_6 = arith.constant 0 : index
    %c0_7 = arith.constant 0 : index
    %c0_8 = arith.constant 0 : index
    %6 = vector.load %arg8[%c0_6, %c0_7, %c0_8] : memref<4x8x1xf32, #tpu.memory_space<vmem>>, vector<4x8x1xf32>
    %cst_9 = arith.constant dense<0xFF800000> : vector<4x8xf32>
    %7 = vector.multi_reduction <maximumf>, %5, %cst_9 [2] : vector<4x8x8xf32> to vector<4x8xf32>
    %8 = vector.shape_cast %7 : vector<4x8xf32> to vector<4x8x1xf32>
    %9 = arith.maximumf %6, %8 : vector<4x8x1xf32>
    %10 = arith.subf %6, %9 : vector<4x8x1xf32>
    %11 = math.exp2 %10 : vector<4x8x1xf32>
    %12 = vector.broadcast %9 : vector<4x8x1xf32> to vector<4x8x8xf32>
    %13 = arith.subf %5, %12 : vector<4x8x8xf32>
    %14 = math.exp2 %13 : vector<4x8x8xf32>
    %c0_10 = arith.constant 0 : index
    %c0_11 = arith.constant 0 : index
    %c0_12 = arith.constant 0 : index
    %15 = vector.load %arg9[%c0_10, %c0_11, %c0_12] : memref<4x8x1xf32, #tpu.memory_space<vmem>>, vector<4x8x1xf32>
    %16 = arith.mulf %11, %15 : vector<4x8x1xf32>
    %cst_13 = arith.constant dense<0.000000e+00> : vector<4x8xf32>
    %17 = vector.multi_reduction <add>, %14, %cst_13 [2] : vector<4x8x8xf32> to vector<4x8xf32>
    %18 = vector.shape_cast %17 : vector<4x8xf32> to vector<4x8x1xf32>
    %19 = arith.addf %16, %18 : vector<4x8x1xf32>
    %c0_14 = arith.constant 0 : index
    %c0_15 = arith.constant 0 : index
    %c0_16 = arith.constant 0 : index
    %20 = vector.load %arg9[%c0_14, %c0_15, %c0_16] : memref<4x8x1xf32, #tpu.memory_space<vmem>>, vector<4x8x1xf32>
    tpu.vector_store %arg9[%c0_14, %c0_15, %c0_16], %19 {strides = array<i32>} : memref<4x8x1xf32, #tpu.memory_space<vmem>>, vector<4x8x1xf32>,
    %c0_17 = arith.constant 0 : index
    %c0_18 = arith.constant 0 : index
    %c0_19 = arith.constant 0 : index
    %21 = vector.load %arg10[%c0_17, %c0_18, %c0_19] : memref<4x8x32xf32, #tpu.memory_space<vmem>>, vector<4x8x32xf32>
    %22 = vector.broadcast %11 : vector<4x8x1xf32> to vector<4x8x32xf32>
    %23 = arith.mulf %22, %21 : vector<4x8x32xf32>
    %c0_20 = arith.constant 0 : index
    %c0_21 = arith.constant 0 : index
    %c0_22 = arith.constant 0 : index
    %24 = vector.load %arg5[%c0_20, %c0_21, %c0_22] : memref<4x8x32xf32, #tpu.memory_space<vmem>>, vector<4x8x32xf32>
    "tpu.trace_start"() <{level = 10 : i32, message = "gqk,gkd->gqd"}> : () -> ()
    %cst_23 = arith.constant dense<0.000000e+00> : vector<4x8x32xf32>
    %25 = tpu.matmul %14, %24, %cst_23 {dimension_numbers = #tpu.dot_dimension_numbers<[2], [1], [1], [2], [0, 0, 0, 1, 1, 2], [0], [0]>} : vector<4x8x8xf32>, vector<4x8x32xf32>, vector<4x8x32xf32> -> vector<4x8x32xf32>
    "tpu.trace_stop"() : () -> ()
    %26 = arith.addf %23, %25 : vector<4x8x32xf32>
    %c0_24 = arith.constant 0 : index
    %c0_25 = arith.constant 0 : index
    %c0_26 = arith.constant 0 : index
    %27 = vector.load %arg10[%c0_24, %c0_25, %c0_26] : memref<4x8x32xf32, #tpu.memory_space<vmem>>, vector<4x8x32xf32>
    tpu.vector_store %arg10[%c0_24, %c0_25, %c0_26], %26 {strides = array<i32>} : memref<4x8x32xf32, #tpu.memory_space<vmem>>, vector<4x8x32xf32>,
    %c0_27 = arith.constant 0 : index
    %c0_28 = arith.constant 0 : index
    %c0_29 = arith.constant 0 : index
    %28 = vector.load %arg8[%c0_27, %c0_28, %c0_29] : memref<4x8x1xf32, #tpu.memory_space<vmem>>, vector<4x8x1xf32>
    tpu.vector_store %arg8[%c0_27, %c0_28, %c0_29], %9 {strides = array<i32>} : memref<4x8x1xf32, #tpu.memory_space<vmem>>, vector<4x8x1xf32>,
    %c0_i32_30 = arith.constant 0 : i32
    %29 = arith.cmpi eq, %arg2, %c0_i32_30 : i32
    %30 = arith.extui %29 : i1 to i32
    %c0_i32_31 = arith.constant 0 : i32
    %31 = arith.cmpi ne, %30, %c0_i32_31 : i32
    scf.if %31 {
      %c0_32 = arith.constant 0 : index
      %c0_33 = arith.constant 0 : index
      %c0_34 = arith.constant 0 : index
      %32 = vector.load %arg9[%c0_32, %c0_33, %c0_34] : memref<4x8x1xf32, #tpu.memory_space<vmem>>, vector<4x8x1xf32>
      %33 = tpu.reciprocal %32 : vector<4x8x1xf32> -> vector<4x8x1xf32>
      %c0_35 = arith.constant 0 : index
      %c0_36 = arith.constant 0 : index
      %c0_37 = arith.constant 0 : index
      %34 = vector.load %arg10[%c0_35, %c0_36, %c0_37] : memref<4x8x32xf32, #tpu.memory_space<vmem>>, vector<4x8x32xf32>
      %35 = vector.broadcast %33 : vector<4x8x1xf32> to vector<4x8x32xf32>
      %36 = arith.mulf %34, %35 : vector<4x8x32xf32>
      %37 = vector.extract_strided_slice %36 {offsets = [0, 0, 0], sizes = [1, 8, 32], strides = [1, 1, 1]} : vector<4x8x32xf32> to vector<1x8x32xf32>
      %38 = vector.shape_cast %37 : vector<1x8x32xf32> to vector<8x32xf32>
      %39 = vector.extract_strided_slice %36 {offsets = [1, 0, 0], sizes = [1, 8, 32], strides = [1, 1, 1]} : vector<4x8x32xf32> to vector<1x8x32xf32>
      %40 = vector.shape_cast %39 : vector<1x8x32xf32> to vector<8x32xf32>
      %41 = vector.extract_strided_slice %36 {offsets = [2, 0, 0], sizes = [1, 8, 32], strides = [1, 1, 1]} : vector<4x8x32xf32> to vector<1x8x32xf32>
      %42 = vector.shape_cast %41 : vector<1x8x32xf32> to vector<8x32xf32>
      %43 = vector.extract_strided_slice %36 {offsets = [3, 0, 0], sizes = [1, 8, 32], strides = [1, 1, 1]} : vector<4x8x32xf32> to vector<1x8x32xf32>
      %44 = vector.shape_cast %43 : vector<1x8x32xf32> to vector<8x32xf32>
      %45 = tpu.concatenate %38, %40, %42, %44 in 1 : vector<8x32xf32>, vector<8x32xf32>, vector<8x32xf32>, vector<8x32xf32> -> vector<8x128xf32>
      %c0_38 = arith.constant 0 : index
      %c0_39 = arith.constant 0 : index
      %c0_40 = arith.constant 0 : index
      %46 = vector.load %arg6[%c0_38, %c0_39, %c0_40] : memref<1x8x128xf32, #tpu.memory_space<vmem>>, vector<1x8x128xf32>
      %47 = vector.shape_cast %46 : vector<1x8x128xf32> to vector<8x128xf32>
      %48 = vector.shape_cast %45 : vector<8x128xf32> to vector<1x8x128xf32>
      tpu.vector_store %arg6[%c0_38, %c0_39, %c0_40], %48 {strides = array<i32>} : memref<1x8x128xf32, #tpu.memory_space<vmem>>, vector<1x8x128xf32>,
    } else {
    }
    return
  }
  func.func @transform_0(%arg0: i32, %arg1: i32, %arg2: i32) -> (i32, i32, i32) {
    %c0_i32 = arith.constant 0 : i32
    %c0_i32_0 = arith.constant 0 : i32
    return %arg0, %arg1, %c0_i32 : i32, i32, i32
  }
  func.func @transform_1(%arg0: i32, %arg1: i32, %arg2: i32) -> (i32, i32, i32) {
    %c0_i32 = arith.constant 0 : i32
    %c0_i32_0 = arith.constant 0 : i32
    return %arg0, %arg2, %c0_i32 : i32, i32, i32
  }
  func.func @transform_2(%arg0: i32, %arg1: i32, %arg2: i32) -> (i32, i32, i32) {
    %c0_i32 = arith.constant 0 : i32
    %c0_i32_0 = arith.constant 0 : i32
    return %arg0, %arg2, %c0_i32 : i32, i32, i32
  }
  func.func @transform_3(%arg0: i32, %arg1: i32, %arg2: i32) -> (i32, i32, i32) {
    %c0_i32 = arith.constant 0 : i32
    %c0_i32_0 = arith.constant 0 : i32
    return %arg0, %arg1, %c0_i32 : i32, i32, i32
  }
}

</mosaic_0001>

<bundles_post_ra>
// kernel: tpu_custom_call.1
= control target key start
LH: loop header
LB: loop body
LE: loop exit
PB: predicated region body
PF: predicated region fallthrough
CT: control target
= control target key end

     0   :  { %8 = vsyncpa [#allocation7], 0  ;;  %s820_s0 = inlined_call_operand.hbm [shape: f32[4,8,32], index: 0, kind: input, shape index: {}]   ;;  %s821_s1 = inlined_call_operand.hbm [shape: f32[4,8,32], index: 1, kind: input, shape index: {}]   ;;  %s822_s2 = inlined_call_operand.hbm [shape: f32[4,8,32], index: 2, kind: input, shape index: {}]   ;;  %s823_s3 = inlined_call_operand.hbm [shape: f32[1,8,128], index: 3, kind: output, shape index: {}]  }
   0x1   :  { %9 = vsyncpa [#allocation10], 0 }
   0x2   :  { %10 = vsyncpa [#allocation8], 0  ;;  %s28_s14 = sshll.u32 %s821_s1, 4  ;;  %s707_s15 = smov [#allocation9]   ;;  %s29_s14 = int_to_ptr.hbm [resolvable:$true] %s28_s14 }
   0x3   :  { %s30_s16 = sshll.u32 %s707_s15, 4  ;;  %s15_s19 = sshll.u32 %s820_s0, 4  ;;  %s31_s16 = int_to_ptr.vmem [resolvable:$true] %s30_s16  ;;  %s16_s19 = int_to_ptr.hbm [resolvable:$true] %s15_s19 }
   0x4   :  { %s708_s20 = smov 128   ;;  %s709_s21 = smov 8  }
   0x5   :  { %36 = dma.hbm_to_vmem [thread:$0]  %s29_s14, 512, %s31_s16, [#allocation10], %s708_s20, %s708_s20, %s709_s21  }
   0x6   :  { %s710_s22 = smov [#allocation6]   ;;  %s41_s26 = sshll.u32 %s822_s2, 4  ;;  %s42_s26 = int_to_ptr.hbm [resolvable:$true] %s41_s26 }
   0x7   :  { %s17_s23 = sshll.u32 %s710_s22, 4  ;;  %s711_s1 = smov [#allocation11]   ;;  %s18_s23 = int_to_ptr.vmem [resolvable:$true] %s17_s23 }
   0x8   :  { %23 = dma.hbm_to_vmem [thread:$0]  %s16_s19, 512, %s18_s23, [#allocation7], %s708_s20, %s708_s20, %s709_s21  }
   0x9   :  { %s43_s27 = sshll.u32 %s711_s1, 4  ;;  %s44_s27 = int_to_ptr.vmem [resolvable:$true] %s43_s27 }
   0xa   :  { %49 = dma.hbm_to_vmem [thread:$0]  %s42_s26, 512, %s44_s27, [#allocation10], %s708_s20, %s708_s20, %s709_s21  }
   0xb   :  { %701 = dma.done.wait [#allocation7], 512  }
   0xc   :  { %702 = vsyncadd [#allocation7], 4294966784 }
   0xd   :  { %703 = dma.done.wait [#allocation10], 1024  }
   0xe   :  { %704 = vsyncadd [#allocation10], 4294966272  ;;  %vm74_vm0 = vcmask 261120   ;;  %v97_v0 = vld [vmem:[#allocation9 + $0x8] sm:$0xff]  ;;  %v98_v1 = vld [vmem:[#allocation9 + $0x10] sm:$0xff]  ;;  %vm79_vm1 = vcmask 7168  }
   0xf   :  { %v67_v2 = vld [vmem:[#allocation6 + $0x8] sm:$0xff]  ;;  %556 = vmatpush.xpose.msk.msra.mxu1 %vm74_vm0, %v97_v0  ;;  %558 = vmatpush.xpose.msk.msra.mxu2 %vm74_vm0, %v98_v1  ;;  %v68_v4 = vld [vmem:[#allocation6 + $0x10] sm:$0xff]  ;;  %v99_v5 = vld [vmem:[#allocation9 + $0x18] sm:$0xff]  ;;  %v712_v15 = vmov -inf   ;;  %vm209_vm2 = vcmask 64512   ;;  %v713_v23 = vmov 0  }
  0x10   :  { %v71_v3 = vmul.f32 0.25503486, %v67_v2  ;;  %v69_v6 = vld [vmem:[#allocation6 + $0x18] sm:$0xff]  ;;  %v72_v7 = vmul.f32 0.25503486, %v68_v4  ;;  %560 = vmatpush.xpose.msk.msra.mxu3 %vm74_vm0, %v99_v5  ;;  %v96_v12 = vld [vmem:[#allocation9] sm:$0xff]  ;;  %580 = vset.pattern.permute.xlu0 %v713_v23 }
  0x11   :  { %v73_v8 = vmul.f32 0.25503486, %v69_v6  ;;  %v66_v13 = vld [vmem:[#allocation6] sm:$0xff]  ;;  %554 = vmatpush.xpose.msk.msra.mxu0 %vm74_vm0, %v96_v12  ;;  %81 = vst.msk [vmem:[#allocation3 + $0x8] sm:$0xff] %vm79_vm1, %v712_v15  ;;  %578 = vset.pattern.permute.xlu1 %v713_v23  ;;  %v714_v24 = vmov 0.0   ;;  %v322_v39 = vld [vmem:[#allocation11 + $0x18] sm:$0xff] }
  0x12   :  { %76 = vst.msk [vmem:[#allocation2 + $0x8] sm:$0xff] %vm74_vm0, %v71_v3  ;;  %v70_v14 = vmul.f32 0.25503486, %v66_v13  ;;  %579 = vset.pattern.permute.xlu2 %v713_v23  ;;  %v320_v40 = vld [vmem:[#allocation11 + $0x8] sm:$0xff]  ;;  %v321_v41 = vld [vmem:[#allocation11 + $0x10] sm:$0xff]  ;;  %v319_v6 = vld [vmem:[#allocation11] sm:$0xff] }
  0x13   :  { %77 = vst.msk [vmem:[#allocation2 + $0x10] sm:$0xff] %vm74_vm0, %v72_v7  ;;  %364 = vmatpush.msrb.mxu1 %v320_v40  ;;  %387 = vmatpush.msrb.mxu2 %v321_v41  ;;  %s715_s0 = smov 64   ;;  %s716_s2 = smov 32  }
  0x14   :  { %78 = vst.msk [vmem:[#allocation2 + $0x18] sm:$0xff] %vm74_vm0, %v73_v8  ;;  %410 = vmatpush.msrb.mxu3 %v322_v39  ;;  %s717_s28 = smov 96   ;;  %s718_s29 = smov [#allocation12]  }
  0x15   :  { %80 = vst.msk [vmem:[#allocation3] sm:$0xff] %vm79_vm1, %v712_v15  ;;  %341 = vmatpush.msrb.mxu0 %v319_v6  ;;  %s541_s30 = sshll.u32 %s718_s29, 4  ;;  %s543_s6 = sshll.u32 %s823_s3, 4  ;;  %s542_s30 = int_to_ptr.vmem [resolvable:$true] %s541_s30  ;;  %s544_s6 = int_to_ptr.hbm [resolvable:$true] %s543_s6 }
  0x16   :  { %75 = vst.msk [vmem:[#allocation2] sm:$0xff] %vm74_vm0, %v70_v14 }
  0x17   :  { %82 = vst.msk [vmem:[#allocation3 + $0x10] sm:$0xff] %vm79_vm1, %v712_v15 }
  0x18   :  { %83 = vst.msk [vmem:[#allocation3 + $0x18] sm:$0xff] %vm79_vm1, %v712_v15  ;;  %v775_v25 = vld [vmem:[#allocation3 + $0x8] sm:$0xff] }
  0x19   :  { %v93_v9 = vld [vmem:[#allocation2 + $0x8] sm:$0xff]  ;;  %87 = vst.msk [vmem:[#allocation4 + $0x18] sm:$0xff] %vm79_vm1, %v714_v24 }
  0x1a   :  { %557 = vmatmul.msk.f32.vlgmr.msra.gmra.mxu1 %vm74_vm0, %v93_v9  ;;  %v94_v10 = vld [vmem:[#allocation2 + $0x10] sm:$0xff]  ;;  %84 = vst.msk [vmem:[#allocation4] sm:$0xff] %vm79_vm1, %v714_v24 }
  0x1b   :  { %559 = vmatmul.msk.f32.vlgmr.msra.gmra.mxu2 %vm74_vm0, %v94_v10  ;;  %v95_v11 = vld [vmem:[#allocation2 + $0x18] sm:$0xff]  ;;  %85 = vst.msk [vmem:[#allocation4 + $0x8] sm:$0xff] %vm79_vm1, %v714_v24 }
  0x1c   :  { %561 = vmatmul.msk.f32.vlgmr.msra.gmra.mxu3 %vm74_vm0, %v95_v11  ;;  %86 = vst.msk [vmem:[#allocation4 + $0x10] sm:$0xff] %vm79_vm1, %v714_v24  ;;  %v205_v53 = vld [vmem:[#allocation3] sm:$0xff] }
  0x1d   :  { %v92_v16 = vld [vmem:[#allocation2] sm:$0xff]  ;;  %88 = vst.msk [vmem:[#allocation5] sm:$0xff] %vm74_vm0, %v714_v24 }
  0x1e   :  { %555 = vmatmul.msk.f32.vlgmr.msra.gmra.mxu0 %vm74_vm0, %v92_v16  ;;  %89 = vst.msk [vmem:[#allocation5 + $0x8] sm:$0xff] %vm74_vm0, %v714_v24  ;;  %v207_v29 = vld [vmem:[#allocation3 + $0x10] sm:$0xff] }
  0x1f   :  { %90 = vst.msk [vmem:[#allocation5 + $0x10] sm:$0xff] %vm74_vm0, %v714_v24  ;;  %v208_v33 = vld [vmem:[#allocation3 + $0x18] sm:$0xff] }
  0x20   :  { %91 = vst.msk [vmem:[#allocation5 + $0x18] sm:$0xff] %vm74_vm0, %v714_v24  ;;  %v265_v59 = vld [vmem:[#allocation4 + $0x18] sm:$0xff] }
  0x23   :  { %v264_v0 = vld [vmem:[#allocation4 + $0x10] sm:$0xff] }
  0x97   :  { %v150_v17 = vpop.f32.mrf.mxu1 }
  0x98   :  { %v213_v18 = vsel %vm209_vm2, %v150_v17, -inf }
  0x99   :  { %214 = vmax.xlane.f32.xlu1 %v213_v18 }
  0x9b   :  { %v787_v37 = vpop.f32.mrf.mxu0 }
  0x9c   :  { %v210_v38 = vsel %vm209_vm2, %v787_v37, -inf }
  0x9e   :  { %v176_v19 = vpop.f32.mrf.mxu2 }
  0x9f   :  { %v216_v20 = vsel %vm209_vm2, %v176_v19, -inf  ;;  %v202_v21 = vpop.f32.mrf.mxu3 }
  0xa0   :  { %217 = vmax.xlane.f32.xlu0 %v216_v20  ;;  %v219_v22 = vsel %vm209_vm2, %v202_v21, -inf }
  0xa8   :  { %220 = vmax.xlane.f32.xlu0 %v219_v22  ;;  %v263_v22 = vld [vmem:[#allocation4 + $0x8] sm:$0xff] }
 0x10c   :  { %v215_v26 = vpop.xlane.xlu1 %214 }
 0x10d   :  { %v778_v27 = vmax.f32 %v775_v25, %v215_v26 }
 0x10f   :  { %v227_v28 = vsub.f32 %v775_v25, %v778_v27  ;;  %424 = vst.msk [vmem:[#allocation3 + $0x8] sm:$0xff] %vm79_vm1, %v778_v27  ;;  %241 = vperm.xlu0 %580, %v778_v27  }
 0x113   :  { %v218_v30 = vpop.xlane.xlu0 %217 }
 0x114   :  { %v224_v31 = vmax.f32 %v207_v29, %v218_v30 }
 0x116   :  { %v228_v32 = vsub.f32 %v207_v29, %v224_v31  ;;  %425 = vst.msk [vmem:[#allocation3 + $0x10] sm:$0xff] %vm79_vm1, %v224_v31  ;;  %246 = vperm.xlu1 %578, %v224_v31  }
 0x11b   :  { %v221_v34 = vpop.xlane.xlu0 %220 }
 0x11c   :  { %v225_v35 = vmax.f32 %v208_v33, %v221_v34 }
 0x11e   :  { %v229_v36 = vsub.f32 %v208_v33, %v225_v35  ;;  %426 = vst.msk [vmem:[#allocation3 + $0x18] sm:$0xff] %vm79_vm1, %v225_v35  ;;  %251 = vperm.xlu2 %579, %v225_v35  }
 0x147   :  { %211 = vmax.xlane.f32.xlu2 %v210_v38 }
 0x178   :  { %v252_v42 = vpop.permute.xlu2 %251 }
 0x179   :  { %v257_v43 = vsub.f32 %v202_v21, %v252_v42 }
 0x17b   :  { %581 = vpow2.f32 %v257_v43 }
 0x181   :  { %v582_v44 = vpop.eup %581  ;;  %v242_v45 = vpop.permute.xlu0 %241 }
 0x182   :  { %565 = vmatmul.msk.f32.vlgmr.msrb.gmra.mxu3 %vm209_vm2, %v582_v44  ;;  %v255_v46 = vsub.f32 %v150_v17, %v242_v45  ;;  %v279_v47 = vsel %vm209_vm2, %v582_v44, 0.0 }
 0x183   :  { %280 = vadd.xlane.f32.xlu0 %v279_v47 }
 0x184   :  { %583 = vpow2.f32 %v255_v46 }
 0x188   :  { %v247_v48 = vpop.permute.xlu1 %246 }
 0x189   :  { %v256_v49 = vsub.f32 %v176_v19, %v247_v48 }
 0x18a   :  { %v584_v50 = vpop.eup %583 }
 0x18b   :  { %585 = vpow2.f32 %v256_v49  ;;  %563 = vmatmul.msk.f32.vlgmr.msrb.gmra.mxu1 %vm209_vm2, %v584_v50  ;;  %v273_v57 = vsel %vm209_vm2, %v584_v50, 0.0 }
 0x18c   :  { %587 = vpow2.f32 %v229_v36 }
 0x18d   :  { %589 = vpow2.f32 %v228_v32 }
 0x191   :  { %v586_v51 = vpop.eup %585 }
 0x192   :  { %564 = vmatmul.msk.f32.vlgmr.msrb.gmra.mxu2 %vm209_vm2, %v586_v51  ;;  %v276_v52 = vsel %vm209_vm2, %v586_v51, 0.0  ;;  %v588_v58 = vpop.eup %587 }
 0x193   :  { %277 = vadd.xlane.f32.xlu2 %v276_v52  ;;  %v269_v60 = vmul.f32 %v588_v58, %v265_v59  ;;  %v590_v63 = vpop.eup %589 }
 0x194   :  { %v268_v1 = vmul.f32 %v590_v63, %v264_v0 }
 0x1ba   :  { %v212_v54 = vpop.xlane.xlu2 %211 }
 0x1bb   :  { %v222_v55 = vmax.f32 %v205_v53, %v212_v54 }
 0x1bd   :  { %v226_v56 = vsub.f32 %v205_v53, %v222_v55  ;;  %423 = vst.msk [vmem:[#allocation3] sm:$0xff] %vm79_vm1, %v222_v55  ;;  %236 = vperm.xlu1 %578, %v222_v55  }
 0x1bf   :  { %591 = vpow2.f32 %v226_v56  ;;  %v262_v56 = vld [vmem:[#allocation4] sm:$0xff] }
 0x1c5   :  { %v799_v3 = vpop.eup %591 }
 0x1e7   :  { %274 = vadd.xlane.f32.xlu1 %v273_v57  ;;  %v266_v57 = vmul.f32 %v799_v3, %v262_v56 }
 0x1f6   :  { %v281_v61 = vpop.xlane.xlu0 %280 }
 0x1f7   :  { %v285_v62 = vadd.f32 %v281_v61, %v269_v60  ;;  %v291_v60 = vld [vmem:[#allocation5] sm:$0xff] }
 0x1f9   :  { %290 = vst.msk [vmem:[#allocation4 + $0x18] sm:$0xff] %vm79_vm1, %v285_v62  ;;  %v292_v62 = vld [vmem:[#allocation5 + $0x8] sm:$0xff] }
 0x200   :  { %307 = vperm.xlu1 %578, %v590_v63   ;;  %v433_v29 = vld [vmem:[#allocation4 + $0x18] sm:$0xff] }
 0x201   :  { %v487_v48 = vand.u32 2147483648, %v433_v29  ;;  %vm481_vm12 = vweird.f32 %v433_v29  ;;  %v485_v49 = vand.u32 2147483647, %v433_v29 }
 0x203   :  { %v488_v51 = vor.u32 1.1754944e-38, %v487_v48  ;;  %vm486_vm14 = vcmp.eq.f32.partialorder %v485_v49, 8.507059e+37 }
 0x206   :  { %v278_v2 = vpop.xlane.xlu2 %277 }
 0x207   :  { %v284_v4 = vadd.f32 %v278_v2, %v268_v1 }
 0x208   :  { %297 = vperm.xlu1 %578, %v799_v3   ;;  %v294_v3 = vld [vmem:[#allocation5 + $0x18] sm:$0xff] }
 0x209   :  { %289 = vst.msk [vmem:[#allocation4 + $0x10] sm:$0xff] %vm79_vm1, %v284_v4  ;;  %v366_v4 = vpop.f32.mrf.mxu1 }
 0x210   :  { %v432_v5 = vld [vmem:[#allocation4 + $0x10] sm:$0xff] }
 0x211   :  { %593 = vrcp.f32 %v432_v5  ;;  %v473_v10 = vand.u32 2147483648, %v432_v5  ;;  %v471_v12 = vand.u32 2147483647, %v432_v5  ;;  %vm467_vm4 = vweird.f32 %v432_v5 }
 0x213   :  { %v474_v14 = vor.u32 1.1754944e-38, %v473_v10  ;;  %vm472_vm6 = vcmp.eq.f32.partialorder %v471_v12, 8.507059e+37 }
 0x215   :  { %v389_v43 = vpop.f32.mrf.mxu2 }
 0x217   :  { %v594_v7 = vpop.eup %593 }
 0x218   :  { %v463_v8 = vmul.f32 %v594_v7, %v432_v5  ;;  %vm468_vm3 = vweird.f32 %v594_v7 }
 0x219   :  { %vm469_vm5 = vmor %vm467_vm4, %vm468_vm3  ;;  %vm531_vm4 = vcmask 523264  }
 0x21a   :  { %v464_v9 = vsub.f32 1.0, %v463_v8 }
 0x21c   :  { %v465_v11 = vmul.f32 %v594_v7, %v464_v9 }
 0x21e   :  { %v466_v13 = vadd.f32 %v594_v7, %v465_v11  ;;  %v412_v11 = vpop.f32.mrf.mxu3 }
 0x220   :  { %v470_v15 = vsel %vm469_vm5, %v594_v7, %v466_v13  ;;  %vm533_vm5 = vcmask 785408  }
 0x221   :  { %v475_v16 = vsel %vm472_vm6, %v474_v14, %v470_v15 }
 0x222   :  { %506 = vperm.xlu0 %580, %v475_v16  }
 0x22f   :  { %v237_v17 = vpop.permute.xlu1 %236 }
 0x230   :  { %v254_v18 = vsub.f32 %v787_v37, %v237_v17 }
 0x232   :  { %595 = vpow2.f32 %v254_v18 }
 0x233   :  { %597 = vpow2.f32 %v227_v28  ;;  %v293_v28 = vld [vmem:[#allocation5 + $0x10] sm:$0xff] }
 0x234   :  { %599 = vrcp.f32 %v433_v29 }
 0x238   :  { %v596_v19 = vpop.eup %595 }
 0x239   :  { %562 = vmatmul.msk.f32.vlgmr.msrb.gmra.mxu0 %vm209_vm2, %v596_v19  ;;  %v270_v20 = vsel %vm209_vm2, %v596_v19, 0.0  ;;  %v598_v21 = vpop.eup %597 }
 0x23a   :  { %271 = vadd.xlane.f32.xlu2 %v270_v20  ;;  %v267_v23 = vmul.f32 %v598_v21, %v263_v22  ;;  %v600_v31 = vpop.eup %599 }
 0x23b   :  { %v477_v32 = vmul.f32 %v600_v31, %v433_v29  ;;  %vm482_vm11 = vweird.f32 %v600_v31 }
 0x23c   :  { %vm483_vm13 = vmor %vm481_vm12, %vm482_vm11 }
 0x23d   :  { %v478_v25 = vsub.f32 1.0, %v477_v32 }
 0x23f   :  { %v479_v40 = vmul.f32 %v600_v31, %v478_v25 }
 0x241   :  { %v480_v47 = vadd.f32 %v600_v31, %v479_v40 }
 0x243   :  { %v484_v50 = vsel %vm483_vm13, %v600_v31, %v480_v47 }
 0x244   :  { %v489_v52 = vsel %vm486_vm14, %v488_v51, %v484_v50 }
 0x252   :  { %302 = vperm.xlu2 %579, %v598_v21  }
 0x25a   :  { %312 = vperm.xlu2 %579, %v588_v58   ;;  %v275_v24 = vpop.xlane.xlu1 %274 }
 0x25b   :  { %v283_v26 = vadd.f32 %v275_v24, %v267_v23 }
 0x25d   :  { %288 = vst.msk [vmem:[#allocation4 + $0x8] sm:$0xff] %vm79_vm1, %v283_v26 }
 0x264   :  { %v431_v30 = vld [vmem:[#allocation4 + $0x8] sm:$0xff] }
 0x265   :  { %601 = vrcp.f32 %v431_v30  ;;  %v459_v27 = vand.u32 2147483648, %v431_v30  ;;  %v457_v37 = vand.u32 2147483647, %v431_v30  ;;  %vm453_vm8 = vweird.f32 %v431_v30 }
 0x267   :  { %v460_v42 = vor.u32 1.1754944e-38, %v459_v27  ;;  %vm458_vm10 = vcmp.eq.f32.partialorder %v457_v37, 8.507059e+37 }
 0x26b   :  { %v602_v33 = vpop.eup %601 }
 0x26c   :  { %v449_v34 = vmul.f32 %v602_v33, %v431_v30  ;;  %vm454_vm7 = vweird.f32 %v602_v33 }
 0x26d   :  { %vm455_vm9 = vmor %vm453_vm8, %vm454_vm7 }
 0x26e   :  { %v450_v35 = vsub.f32 1.0, %v449_v34 }
 0x270   :  { %v451_v36 = vmul.f32 %v602_v33, %v450_v35 }
 0x272   :  { %v308_v38 = vpop.permute.xlu1 %307  ;;  %v452_v39 = vadd.f32 %v602_v33, %v451_v36 }
 0x273   :  { %v317_v41 = vmul.f32 %v308_v38, %v293_v28 }
 0x274   :  { %v456_v44 = vsel %vm455_vm9, %v602_v33, %v452_v39 }
 0x275   :  { %v417_v45 = vadd.f32 %v389_v43, %v317_v41  ;;  %v461_v46 = vsel %vm458_vm10, %v460_v42, %v456_v44 }
 0x276   :  { %501 = vperm.xlu2 %579, %v461_v46  }
 0x277   :  { %421 = vst.msk [vmem:[#allocation5 + $0x10] sm:$0xff] %vm74_vm0, %v417_v45 }
 0x27a   :  { %v298_v61 = vpop.permute.xlu1 %297 }
 0x27b   :  { %v315_v63 = vmul.f32 %v298_v61, %v291_v60 }
 0x27e   :  { %511 = vperm.xlu2 %579, %v489_v52   ;;  %v492_v53 = vld [vmem:[#allocation5 + $0x10] sm:$0xff] }
 0x294   :  { %v507_v54 = vpop.permute.xlu0 %506 }
 0x295   :  { %v516_v55 = vmul.f32 %v507_v54, %v492_v53 }
 0x297   :  { %523 = vrot.lane.b32.xlu0 %v516_v55, %s715_s0 }
 0x2ad   :  { %v272_v58 = vpop.xlane.xlu2 %271 }
 0x2ae   :  { %v282_v59 = vadd.f32 %v272_v58, %v266_v57 }
 0x2b0   :  { %287 = vst.msk [vmem:[#allocation4] sm:$0xff] %vm79_vm1, %v282_v59 }
 0x2b5   :  { %v303_v0 = vpop.permute.xlu2 %302 }
 0x2b6   :  { %v316_v1 = vmul.f32 %v303_v0, %v292_v62  ;;  %v343_v2 = vpop.f32.mrf.mxu0 }
 0x2b7   :  { %v415_v5 = vadd.f32 %v343_v2, %v315_v63  ;;  %v430_v6 = vld [vmem:[#allocation4] sm:$0xff] }
 0x2b8   :  { %v416_v7 = vadd.f32 %v366_v4, %v316_v1  ;;  %603 = vrcp.f32 %v430_v6  ;;  %v445_v15 = vand.u32 2147483648, %v430_v6  ;;  %v443_v17 = vand.u32 2147483647, %v430_v6 }
 0x2b9   :  { %419 = vst.msk [vmem:[#allocation5] sm:$0xff] %vm74_vm0, %v415_v5  ;;  %vm439_vm1 = vweird.f32 %v430_v6 }
 0x2ba   :  { %420 = vst.msk [vmem:[#allocation5 + $0x8] sm:$0xff] %vm74_vm0, %v416_v7  ;;  %v446_v19 = vor.u32 1.1754944e-38, %v445_v15  ;;  %vm444_vm3 = vcmp.eq.f32.partialorder %v443_v17, 8.507059e+37 }
 0x2bd   :  { %v313_v8 = vpop.permute.xlu2 %312 }
 0x2be   :  { %v604_v9 = vpop.eup %603  ;;  %v318_v10 = vmul.f32 %v313_v8, %v294_v3 }
 0x2bf   :  { %v435_v12 = vmul.f32 %v604_v9, %v430_v6  ;;  %vm440_vm15 = vweird.f32 %v604_v9 }
 0x2c0   :  { %v418_v13 = vadd.f32 %v412_v11, %v318_v10  ;;  %vm441_vm2 = vmor %vm439_vm1, %vm440_vm15  ;;  %v490_v32 = vld [vmem:[#allocation5] sm:$0xff] }
 0x2c1   :  { %v436_v14 = vsub.f32 1.0, %v435_v12  ;;  %v491_v22 = vld [vmem:[#allocation5 + $0x8] sm:$0xff] }
 0x2c2   :  { %422 = vst.msk [vmem:[#allocation5 + $0x18] sm:$0xff] %vm74_vm0, %v418_v13 }
 0x2c3   :  { %v437_v16 = vmul.f32 %v604_v9, %v436_v14 }
 0x2c5   :  { %v438_v18 = vadd.f32 %v604_v9, %v437_v16 }
 0x2c7   :  { %v442_v20 = vsel %vm441_vm2, %v604_v9, %v438_v18 }
 0x2c8   :  { %v447_v21 = vsel %vm444_vm3, %v446_v19, %v442_v20 }
 0x2c9   :  { %496 = vperm.xlu2 %579, %v447_v21   ;;  %v493_v26 = vld [vmem:[#allocation5 + $0x18] sm:$0xff] }
 0x2d0   :  { %v502_v23 = vpop.permute.xlu2 %501 }
 0x2d1   :  { %v515_v24 = vmul.f32 %v502_v23, %v491_v22 }
 0x2d3   :  { %519 = vrot.lane.b32.xlu1 %v515_v24, %s716_s2 }
 0x2d8   :  { %v512_v29 = vpop.permute.xlu2 %511 }
 0x2d9   :  { %v517_v30 = vmul.f32 %v512_v29, %v493_v26 }
 0x2db   :  { %527 = vrot.lane.b32.xlu2 %v517_v30, %s717_s28 }
 0x309   :  { %v524_v35 = vpop.permute.xlu0 %523 }
 0x323   :  { %v497_v31 = vpop.permute.xlu2 %496 }
 0x324   :  { %v514_v33 = vmul.f32 %v497_v31, %v490_v32 }
 0x335   :  { %v528_v27 = vpop.permute.xlu2 %527 }
 0x345   :  { %v520_v34 = vpop.permute.xlu1 %519 }
 0x346   :  { %v530_v25 = vsel %vm74_vm0, %v514_v33, %v520_v34 }
 0x347   :  { %v532_v28 = vsel %vm531_vm4, %v530_v25, %v524_v35 }
 0x348   :  { %v534_v36 = vsel %vm533_vm5, %v532_v28, %v528_v27 }
 0x349   :  { %535 = vst [vmem:[#allocation12] sm:$0xff] %v534_v36 }
 0x34a   :  { %546 = dma.vmem_to_hbm [thread:$0]  %s542_s30, 128, %s544_s6, [#allocation8]  }
 0x34b   :  { %705 = dma.done.wait [#allocation8], 128  }
 0x34c   :  { %706 = vsyncadd [#allocation8], 4294967168 }
 0x34d   :  { %551 = vsyncpa [#allocation7], 1 }
 0x34e   :  { %552 = vsyncpa [#allocation10], 1 }
 0x34f   :  { %553 = vsyncpa [#allocation8], 1 }

</bundles_post_ra>
